<compile_context>
chip_gen: v7x
topology: tpu7x:2x2x1
jax: 0.10.0
libtpu: 0.0.40
codegen_flags: <defaults>
</compile_context>

<pallas_src>
import jax
import jax.numpy as jnp
from jax.experimental import pallas as pl
from jax.experimental.pallas import tpu as pltpu


# ----------------------------------------------------------------------------------
# Kernels
# ----------------------------------------------------------------------------------
def _conv_pool_kernel_fast(x_ref, w_ref, b_ref, sel_h_ref, sel_w_ref, out_ref):
    """x: (TB,C,H,W) VMEM | w: (C,) SMEM | b: (1,) SMEM | sel_h: (Ho,H-2) VMEM |
    sel_w: (W-2,Wo) VMEM | out: (TB,Ho,Wo) VMEM."""
    TB, C, H, W = x_ref.shape
    _, Ho, Wo = out_ref.shape

    sel_h = sel_h_ref[...]          # one-hot rows: sel_h[i, 3i] = 1
    sel_w = sel_w_ref[...]          # one-hot cols: sel_w[3j, j] = 1
    bias = b_ref[0]

    def per_image(t, carry):
        # --- 1x1 conv to a single channel: weighted channel sum (VPU MACs). ---
        y = x_ref[t, 0].astype(jnp.float32) * w_ref[0]
        if C <= 16:
            for c in range(1, C):                       # static unroll for small C
                y = y + x_ref[t, c].astype(jnp.float32) * w_ref[c]
        else:
            def mac(c, acc):
                return acc + x_ref[t, c].astype(jnp.float32) * w_ref[c]
            y = jax.lax.fori_loop(1, C, mac, y, unroll=8)

        # --- 3-wide window maxima via shifted slices (bias deferred to after pool). ---
        r = jnp.maximum(jnp.maximum(y[0:H - 2, :], y[1:H - 1, :]), y[2:H, :])   # (H-2, W)
        m = jnp.maximum(jnp.maximum(r[:, 0:W - 2], r[:, 1:W - 1]), r[:, 2:W])   # (H-2, W-2)

        # --- stride-3 down-sample: one one-hot matmul per axis, then bias. ---
        p = jnp.dot(sel_h, m, preferred_element_type=jnp.float32)               # (Ho, W-2)
        p = jnp.dot(p, sel_w, preferred_element_type=jnp.float32)               # (Ho, Wo)
        out_ref[t, :, :] = (p + bias).astype(out_ref.dtype)
        return carry

    jax.lax.fori_loop(0, TB, per_image, 0)


def _conv_pool_kernel_matmul(x_ref, w_ref, b_ref, out_ref):
    """Known-good fallback: exact 0/1 selection matmuls for the pool (6 matmuls/img)."""
    TB, C, H, W = x_ref.shape
    _, Ho, Wo = out_ref.shape

    hi = jax.lax.broadcasted_iota(jnp.int32, (Ho, H), 0)
    hh = jax.lax.broadcasted_iota(jnp.int32, (Ho, H), 1)
    ww = jax.lax.broadcasted_iota(jnp.int32, (W, Wo), 0)
    wj = jax.lax.broadcasted_iota(jnp.int32, (W, Wo), 1)
    sel_h = [jnp.where(hh == 3 * hi + dh, 1.0, 0.0).astype(jnp.float32) for dh in range(3)]
    sel_w = [jnp.where(ww == 3 * wj + dj, 1.0, 0.0).astype(jnp.float32) for dj in range(3)]
    bias = b_ref[0]

    for t in range(TB):
        y = x_ref[t, 0, :, :].astype(jnp.float32) * w_ref[0]
        for c in range(1, C):
            y = y + x_ref[t, c, :, :].astype(jnp.float32) * w_ref[c]
        y = y + bias
        r = jnp.dot(sel_h[0], y, preferred_element_type=jnp.float32)
        r = jnp.maximum(r, jnp.dot(sel_h[1], y, preferred_element_type=jnp.float32))
        r = jnp.maximum(r, jnp.dot(sel_h[2], y, preferred_element_type=jnp.float32))
        p = jnp.dot(r, sel_w[0], preferred_element_type=jnp.float32)
        p = jnp.maximum(p, jnp.dot(r, sel_w[1], preferred_element_type=jnp.float32))
        p = jnp.maximum(p, jnp.dot(r, sel_w[2], preferred_element_type=jnp.float32))
        out_ref[t, :, :] = p.astype(out_ref.dtype)


# ----------------------------------------------------------------------------------
# Sizing helpers
# ----------------------------------------------------------------------------------
def _vmem_limit_bytes():
    """Generation-aware scoped-VMEM limit: 64 MiB on 128-MiB-VMEM parts (v5e/v6e),
    48 MiB otherwise (safe on v7x's 64 MiB physical and as a general fallback)."""
    default = 48 * 1024 * 1024
    try:
        cap = int(getattr(pltpu.get_tpu_info(), "vmem_capacity_bytes", 0))
        if cap >= 96 * 1024 * 1024:
            return 64 * 1024 * 1024
    except Exception:
        pass
    return default


def _pick_batch_tile(B, C, H, W, Ho, Wo, in_itemsize, vmem_budget_bytes,
                     target_block_bytes=4 * 1024 * 1024):
    """Largest batch tile that (a) divides B, (b) keeps >= 2 grid steps when B allows
    (pipeline + v7x megacore split), (c) fits double-buffered input/output blocks plus
    per-image intermediates in the budget, (d) targets a multi-MiB input block
    (per-grid-step overhead ~0.35 us; tiny blocks sit far below the HBM roofline)."""
    per_in = C * H * W * in_itemsize
    per_out = Ho * Wo * 4
    work = 8 * H * W * 4                      # per-image temporaries (fori-loop bounded)
    usable = max(vmem_budget_bytes - work, per_in)
    fit = max(1, usable // (2 * (per_in + per_out)))
    target = max(1, target_block_bytes // per_in)
    cap = max(1, min(fit, target))
    best = 1
    for tb in range(1, B + 1):
        if B % tb or tb > cap:
            continue
        if B >= 2 and tb > 1 and B // tb < 2:  # keep at least 2 grid steps
            continue
        best = tb
    return best


# ----------------------------------------------------------------------------------
# Wrapper
# ----------------------------------------------------------------------------------
def conv_pool_reducing_layer(vision, weight, bias, *, batch_tile=None):
    """Pallas implementation of ConvPoolReducingLayer.forward.

    vision: (B, C, H, W); weight: conv1 weight (1, C, 1, 1); bias: (1,).
    Returns (B, (H//3)*(W//3)) float32.
    """
    B, C, H, W = vision.shape
    Ho, Wo = H // 3, W // 3
    assert Ho >= 1 and Wo >= 1, "spatial dims must be >= 3 for max_pool2d(kernel_size=3)"

    vmem_limit = _vmem_limit_bytes()
    TB = batch_tile if batch_tile is not None else _pick_batch_tile(
        B, C, H, W, Ho, Wo, vision.dtype.itemsize,
        vmem_budget_bytes=vmem_limit - 4 * 1024 * 1024)
    assert B % TB == 0, (B, TB)

    w_vec = weight.reshape(C).astype(jnp.float32)    # (1, C, 1, 1) -> (C,)
    b_vec = bias.reshape(1).astype(jnp.float32)      # (1,)

    # One-hot stride-3 down-sample matrices, built once and kept resident in VMEM.
    sel_h = (jnp.arange(H - 2)[None, :] == 3 * jnp.arange(Ho)[:, None]).astype(jnp.float32)
    sel_w = (jnp.arange(W - 2)[:, None] == 3 * jnp.arange(Wo)[None, :]).astype(jnp.float32)

    grid = (B // TB,)
    x_spec = pl.BlockSpec((TB, C, H, W), lambda b: (b, 0, 0, 0))
    smem_spec = pl.BlockSpec(memory_space=pltpu.MemorySpace.SMEM)
    out_spec = pl.BlockSpec((TB, Ho, Wo), lambda b: (b, 0, 0))
    out_shape = jax.ShapeDtypeStruct((B, Ho, Wo), jnp.float32)
    compiler_params = pltpu.CompilerParams(
        dimension_semantics=("parallel",),            # megacore split on v7x
        vmem_limit_bytes=vmem_limit,
    )

    # HBM-dominated cost model: the two small one-hot matmuls are noise next to the
    # B*C*H*W input read.
    flops = (2 * B * C * H * W                        # channel MACs
             + 4 * B * H * W                          # window maxima
             + 2 * B * Ho * (H - 2) * (W - 2)         # row down-sample matmul
             + 2 * B * Ho * (W - 2) * Wo              # col down-sample matmul
             + B * Ho * Wo)                           # bias
    bytes_accessed = (B * C * H * W * vision.dtype.itemsize + B * Ho * Wo * 4
                      + int(sel_h.size) * 4 + int(sel_w.size) * 4 + (C + 1) * 4)
    cost = pl.CostEstimate(flops=flops, transcendentals=0, bytes_accessed=bytes_accessed)

    try:
        out = pl.pallas_call(
            _conv_pool_kernel_fast,
            out_shape=out_shape,
            grid=grid,
            in_specs=[x_spec, smem_spec, smem_spec,
                      pl.BlockSpec((Ho, H - 2), lambda b: (0, 0)),
                      pl.BlockSpec((W - 2, Wo), lambda b: (0, 0))],
            out_specs=out_spec,
            compiler_params=compiler_params,
            cost_estimate=cost,
        )(vision, w_vec, b_vec, sel_h, sel_w)
        out = jax.block_until_ready(out)
    except Exception:
        # Graceful degradation: identical math via exact selection matmuls (known-good).
        out = pl.pallas_call(
            _conv_pool_kernel_matmul,
            out_shape=out_shape,
            grid=grid,
            in_specs=[x_spec, smem_spec, smem_spec],
            out_specs=out_spec,
            compiler_params=compiler_params,
            cost_estimate=cost,
        )(vision, w_vec, b_vec)
        out = jax.block_until_ready(out)

    return out.reshape(B, Ho * Wo)                    # .view(batch_size, -1)


def conv_pool_ref(vision, weight, bias):
    """Pure-JAX reference mirroring the PyTorch forward."""
    B, C, H, W = vision.shape
    y = jnp.einsum("bchw,c->bhw", vision, weight.reshape(C)) + bias.reshape(())
    Ho, Wo = H // 3, W // 3
    y = y[:, : Ho * 3, : Wo * 3].reshape(B, Ho, 3, Wo, 3)
    return y.max(axis=(2, 4)).reshape(B, -1)


if __name__ == "__main__":
    key = jax.random.PRNGKey(0)
    B, C, H, W = 2, 4, 16, 16                         # batch, in_channels, spatial

    k0, k1, k2 = jax.random.split(key, 3)
    vision = jax.random.normal(k0, (B, C, H, W), jnp.float32)

    # PyTorch Conv2d default init: uniform(-1/sqrt(fan_in), 1/sqrt(fan_in)), fan_in = C.
    bound = 1.0 / (C ** 0.5)
    weight = jax.random.uniform(k1, (1, C, 1, 1), jnp.float32, -bound, bound)
    bias = jax.random.uniform(k2, (1,), jnp.float32, -bound, bound)

    out = conv_pool_reducing_layer(vision, weight, bias)
    out = jax.block_until_ready(out)

    ref = conv_pool_ref(vision, weight, bias)
    assert out.shape == (B, (H // 3) * (W // 3)), out.shape
    assert jnp.allclose(out, ref, atol=1e-5, rtol=1e-5), "mismatch vs reference"
    print("KERNEL_OK")
</pallas_src>

<mosaic_0001>
module attributes {stable_mosaic.version = 11 : i64} {
  func.func @_conv_pool_kernel_fast(%arg0: i32, %arg1: memref<1x4x16x16xf32, #tpu.memory_space<vmem>>, %arg2: memref<4xf32, #tpu.memory_space<smem>>, %arg3: memref<1xf32, #tpu.memory_space<smem>>, %arg4: memref<5x14xf32, #tpu.memory_space<vmem>>, %arg5: memref<14x5xf32, #tpu.memory_space<vmem>>, %arg6: memref<1x5x5xf32, #tpu.memory_space<vmem>>) attributes {dimension_semantics = [#tpu.dimension_semantics<parallel>], iteration_bounds = array<i64: 2>, scalar_prefetch = 0 : i64, scratch_operands = 0 : i64, tpu.core_type = #tpu.core_type<tc>, window_params = [{transform_indices = @transform_0, window_bounds = array<i64: 1, 4, 16, 16>}, {transform_indices = @transform_1, window_bounds = array<i64: 4>}, {transform_indices = @transform_2, window_bounds = array<i64: 1>}, {pipeline_mode = #tpu.pipeline_mode<synchronous>, transform_indices = @transform_3, window_bounds = array<i64: 5, 14>}, {pipeline_mode = #tpu.pipeline_mode<synchronous>, transform_indices = @transform_4, window_bounds = array<i64: 14, 5>}, {transform_indices = @transform_5, window_bounds = array<i64: 1, 5, 5>}]} {
    %c0 = arith.constant 0 : index
    %c0_0 = arith.constant 0 : index
    %0 = vector.load %arg4[%c0, %c0_0] : memref<5x14xf32, #tpu.memory_space<vmem>>, vector<5x14xf32>
    %c0_1 = arith.constant 0 : index
    %c0_2 = arith.constant 0 : index
    %1 = vector.load %arg5[%c0_1, %c0_2] : memref<14x5xf32, #tpu.memory_space<vmem>>, vector<14x5xf32>
    %c0_3 = arith.constant 0 : index
    %2 = memref.load %arg3[%c0_3] : memref<1xf32, #tpu.memory_space<smem>>
    %c0_i32 = arith.constant 0 : i32
    %3 = arith.index_cast %c0_i32 : i32 to index
    %c0_4 = arith.constant 0 : index
    %c0_5 = arith.constant 0 : index
    %c0_6 = arith.constant 0 : index
    %4 = vector.load %arg1[%3, %c0_4, %c0_5, %c0_6] : memref<1x4x16x16xf32, #tpu.memory_space<vmem>>, vector<1x1x16x16xf32>
    %5 = vector.shape_cast %4 : vector<1x1x16x16xf32> to vector<16x16xf32>
    %c0_7 = arith.constant 0 : index
    %6 = memref.load %arg2[%c0_7] : memref<4xf32, #tpu.memory_space<smem>>
    %7 = vector.broadcast %6 : f32 to vector<16x16xf32>
    %8 = arith.mulf %5, %7 : vector<16x16xf32>
    %9 = arith.index_cast %c0_i32 : i32 to index
    %c1 = arith.constant 1 : index
    %c0_8 = arith.constant 0 : index
    %c0_9 = arith.constant 0 : index
    %10 = vector.load %arg1[%9, %c1, %c0_8, %c0_9] : memref<1x4x16x16xf32, #tpu.memory_space<vmem>>, vector<1x1x16x16xf32>
    %11 = vector.shape_cast %10 : vector<1x1x16x16xf32> to vector<16x16xf32>
    %c1_10 = arith.constant 1 : index
    %12 = memref.load %arg2[%c1_10] : memref<4xf32, #tpu.memory_space<smem>>
    %13 = vector.broadcast %12 : f32 to vector<16x16xf32>
    %14 = arith.mulf %11, %13 : vector<16x16xf32>
    %15 = arith.addf %8, %14 : vector<16x16xf32>
    %16 = arith.index_cast %c0_i32 : i32 to index
    %c2 = arith.constant 2 : index
    %c0_11 = arith.constant 0 : index
    %c0_12 = arith.constant 0 : index
    %17 = vector.load %arg1[%16, %c2, %c0_11, %c0_12] : memref<1x4x16x16xf32, #tpu.memory_space<vmem>>, vector<1x1x16x16xf32>
    %18 = vector.shape_cast %17 : vector<1x1x16x16xf32> to vector<16x16xf32>
    %c2_13 = arith.constant 2 : index
    %19 = memref.load %arg2[%c2_13] : memref<4xf32, #tpu.memory_space<smem>>
    %20 = vector.broadcast %19 : f32 to vector<16x16xf32>
    %21 = arith.mulf %18, %20 : vector<16x16xf32>
    %22 = arith.addf %15, %21 : vector<16x16xf32>
    %23 = arith.index_cast %c0_i32 : i32 to index
    %c3 = arith.constant 3 : index
    %c0_14 = arith.constant 0 : index
    %c0_15 = arith.constant 0 : index
    %24 = vector.load %arg1[%23, %c3, %c0_14, %c0_15] : memref<1x4x16x16xf32, #tpu.memory_space<vmem>>, vector<1x1x16x16xf32>
    %25 = vector.shape_cast %24 : vector<1x1x16x16xf32> to vector<16x16xf32>
    %c3_16 = arith.constant 3 : index
    %26 = memref.load %arg2[%c3_16] : memref<4xf32, #tpu.memory_space<smem>>
    %27 = vector.broadcast %26 : f32 to vector<16x16xf32>
    %28 = arith.mulf %25, %27 : vector<16x16xf32>
    %29 = arith.addf %22, %28 : vector<16x16xf32>
    %30 = vector.extract_strided_slice %29 {offsets = [0, 0], sizes = [14, 16], strides = [1, 1]} : vector<16x16xf32> to vector<14x16xf32>
    %31 = vector.extract_strided_slice %29 {offsets = [1, 0], sizes = [14, 16], strides = [1, 1]} : vector<16x16xf32> to vector<14x16xf32>
    %32 = arith.maximumf %30, %31 : vector<14x16xf32>
    %33 = vector.extract_strided_slice %29 {offsets = [2, 0], sizes = [14, 16], strides = [1, 1]} : vector<16x16xf32> to vector<14x16xf32>
    %34 = arith.maximumf %32, %33 : vector<14x16xf32>
    %35 = vector.extract_strided_slice %34 {offsets = [0, 0], sizes = [14, 14], strides = [1, 1]} : vector<14x16xf32> to vector<14x14xf32>
    %36 = vector.extract_strided_slice %34 {offsets = [0, 1], sizes = [14, 14], strides = [1, 1]} : vector<14x16xf32> to vector<14x14xf32>
    %37 = arith.maximumf %35, %36 : vector<14x14xf32>
    %38 = vector.extract_strided_slice %34 {offsets = [0, 2], sizes = [14, 14], strides = [1, 1]} : vector<14x16xf32> to vector<14x14xf32>
    %39 = arith.maximumf %37, %38 : vector<14x14xf32>
    %cst = arith.constant dense<0.000000e+00> : vector<5x14xf32>
    %40 = tpu.matmul %0, %39, %cst {dimension_numbers = #tpu.dot_dimension_numbers<[1], [0], [0], [1], [0, 0, 1, 1], [], []>} : vector<5x14xf32>, vector<14x14xf32>, vector<5x14xf32> -> vector<5x14xf32>
    %cst_17 = arith.constant dense<0.000000e+00> : vector<5x5xf32>
    %41 = tpu.matmul %40, %1, %cst_17 {dimension_numbers = #tpu.dot_dimension_numbers<[1], [0], [0], [1], [0, 0, 1, 1], [], []>} : vector<5x14xf32>, vector<14x5xf32>, vector<5x5xf32> -> vector<5x5xf32>
    %42 = vector.broadcast %2 : f32 to vector<5x5xf32>
    %43 = arith.addf %41, %42 : vector<5x5xf32>
    %44 = arith.index_cast %c0_i32 : i32 to index
    %c0_18 = arith.constant 0 : index
    %c0_19 = arith.constant 0 : index
    %45 = vector.load %arg6[%44, %c0_18, %c0_19] : memref<1x5x5xf32, #tpu.memory_space<vmem>>, vector<1x5x5xf32>
    %46 = vector.shape_cast %45 : vector<1x5x5xf32> to vector<5x5xf32>
    %47 = vector.shape_cast %43 : vector<5x5xf32> to vector<1x5x5xf32>
    tpu.vector_store %arg6[%44, %c0_18, %c0_19], %47 {strides = array<i32>} : memref<1x5x5xf32, #tpu.memory_space<vmem>>, vector<1x5x5xf32>,
    %c1_i32 = arith.constant 1 : i32
    return
  }
  func.func @transform_0(%arg0: i32) -> (i32, i32, i32, i32) {
    %c0_i32 = arith.constant 0 : i32
    %c0_i32_0 = arith.constant 0 : i32
    %c0_i32_1 = arith.constant 0 : i32
    %c0_i32_2 = arith.constant 0 : i32
    return %arg0, %c0_i32, %c0_i32_0, %c0_i32_1 : i32, i32, i32, i32
  }
  func.func @transform_1(%arg0: i32) -> i32 {
    %c0_i32 = arith.constant 0 : i32
    %c0_i32_0 = arith.constant 0 : i32
    return %c0_i32 : i32
  }
  func.func @transform_2(%arg0: i32) -> i32 {
    %c0_i32 = arith.constant 0 : i32
    %c0_i32_0 = arith.constant 0 : i32
    return %c0_i32 : i32
  }
  func.func @transform_3(%arg0: i32) -> (i32, i32) {
    %c0_i32 = arith.constant 0 : i32
    %c0_i32_0 = arith.constant 0 : i32
    %c0_i32_1 = arith.constant 0 : i32
    return %c0_i32, %c0_i32_0 : i32, i32
  }
  func.func @transform_4(%arg0: i32) -> (i32, i32) {
    %c0_i32 = arith.constant 0 : i32
    %c0_i32_0 = arith.constant 0 : i32
    %c0_i32_1 = arith.constant 0 : i32
    return %c0_i32, %c0_i32_0 : i32, i32
  }
  func.func @transform_5(%arg0: i32) -> (i32, i32, i32) {
    %c0_i32 = arith.constant 0 : i32
    %c0_i32_0 = arith.constant 0 : i32
    %c0_i32_1 = arith.constant 0 : i32
    return %arg0, %c0_i32, %c0_i32_0 : i32, i32, i32
  }
}

module attributes {stable_mosaic.version = 11 : i64} {
  func.func @_conv_pool_kernel_matmul(%arg0: i32, %arg1: memref<1x4x16x16xf32, #tpu.memory_space<vmem>>, %arg2: memref<4xf32, #tpu.memory_space<smem>>, %arg3: memref<1xf32, #tpu.memory_space<smem>>, %arg4: memref<1x5x5xf32, #tpu.memory_space<vmem>>) attributes {dimension_semantics = [#tpu.dimension_semantics<parallel>], iteration_bounds = array<i64: 2>, scalar_prefetch = 0 : i64, scratch_operands = 0 : i64, tpu.core_type = #tpu.core_type<tc>, window_params = [{transform_indices = @transform_0, window_bounds = array<i64: 1, 4, 16, 16>}, {transform_indices = @transform_1, window_bounds = array<i64: 4>}, {transform_indices = @transform_2, window_bounds = array<i64: 1>}, {transform_indices = @transform_3, window_bounds = array<i64: 1, 5, 5>}]} {
    %0 = tpu.iota {dimensions = array<i32: 0>} : vector<5x16xi32>
    %1 = tpu.iota {dimensions = array<i32: 1>} : vector<5x16xi32>
    %2 = tpu.iota {dimensions = array<i32: 0>} : vector<16x5xi32>
    %3 = tpu.iota {dimensions = array<i32: 1>} : vector<16x5xi32>
    %c3_i32 = arith.constant 3 : i32
    %4 = vector.broadcast %c3_i32 : i32 to vector<5x16xi32>
    %5 = arith.muli %4, %0 : vector<5x16xi32>
    %c0_i32 = arith.constant 0 : i32
    %6 = vector.broadcast %c0_i32 : i32 to vector<5x16xi32>
    %7 = arith.addi %5, %6 : vector<5x16xi32>
    %8 = arith.cmpi eq, %1, %7 : vector<5x16xi32>
    %cst = arith.constant 1.000000e+00 : f32
    %cst_0 = arith.constant 0.000000e+00 : f32
    %9 = vector.broadcast %cst : f32 to vector<5x16xf32>
    %10 = vector.broadcast %cst_0 : f32 to vector<5x16xf32>
    %11 = arith.select %8, %9, %10 : vector<5x16xi1>, vector<5x16xf32>
    %c3_i32_1 = arith.constant 3 : i32
    %12 = vector.broadcast %c3_i32_1 : i32 to vector<5x16xi32>
    %13 = arith.muli %12, %0 : vector<5x16xi32>
    %c1_i32 = arith.constant 1 : i32
    %14 = vector.broadcast %c1_i32 : i32 to vector<5x16xi32>
    %15 = arith.addi %13, %14 : vector<5x16xi32>
    %16 = arith.cmpi eq, %1, %15 : vector<5x16xi32>
    %cst_2 = arith.constant 1.000000e+00 : f32
    %cst_3 = arith.constant 0.000000e+00 : f32
    %17 = vector.broadcast %cst_2 : f32 to vector<5x16xf32>
    %18 = vector.broadcast %cst_3 : f32 to vector<5x16xf32>
    %19 = arith.select %16, %17, %18 : vector<5x16xi1>, vector<5x16xf32>
    %c3_i32_4 = arith.constant 3 : i32
    %20 = vector.broadcast %c3_i32_4 : i32 to vector<5x16xi32>
    %21 = arith.muli %20, %0 : vector<5x16xi32>
    %c2_i32 = arith.constant 2 : i32
    %22 = vector.broadcast %c2_i32 : i32 to vector<5x16xi32>
    %23 = arith.addi %21, %22 : vector<5x16xi32>
    %24 = arith.cmpi eq, %1, %23 : vector<5x16xi32>
    %cst_5 = arith.constant 1.000000e+00 : f32
    %cst_6 = arith.constant 0.000000e+00 : f32
    %25 = vector.broadcast %cst_5 : f32 to vector<5x16xf32>
    %26 = vector.broadcast %cst_6 : f32 to vector<5x16xf32>
    %27 = arith.select %24, %25, %26 : vector<5x16xi1>, vector<5x16xf32>
    %c3_i32_7 = arith.constant 3 : i32
    %28 = vector.broadcast %c3_i32_7 : i32 to vector<16x5xi32>
    %29 = arith.muli %28, %3 : vector<16x5xi32>
    %c0_i32_8 = arith.constant 0 : i32
    %30 = vector.broadcast %c0_i32_8 : i32 to vector<16x5xi32>
    %31 = arith.addi %29, %30 : vector<16x5xi32>
    %32 = arith.cmpi eq, %2, %31 : vector<16x5xi32>
    %cst_9 = arith.constant 1.000000e+00 : f32
    %cst_10 = arith.constant 0.000000e+00 : f32
    %33 = vector.broadcast %cst_9 : f32 to vector<16x5xf32>
    %34 = vector.broadcast %cst_10 : f32 to vector<16x5xf32>
    %35 = arith.select %32, %33, %34 : vector<16x5xi1>, vector<16x5xf32>
    %c3_i32_11 = arith.constant 3 : i32
    %36 = vector.broadcast %c3_i32_11 : i32 to vector<16x5xi32>
    %37 = arith.muli %36, %3 : vector<16x5xi32>
    %c1_i32_12 = arith.constant 1 : i32
    %38 = vector.broadcast %c1_i32_12 : i32 to vector<16x5xi32>
    %39 = arith.addi %37, %38 : vector<16x5xi32>
    %40 = arith.cmpi eq, %2, %39 : vector<16x5xi32>
    %cst_13 = arith.constant 1.000000e+00 : f32
    %cst_14 = arith.constant 0.000000e+00 : f32
    %41 = vector.broadcast %cst_13 : f32 to vector<16x5xf32>
    %42 = vector.broadcast %cst_14 : f32 to vector<16x5xf32>
    %43 = arith.select %40, %41, %42 : vector<16x5xi1>, vector<16x5xf32>
    %c3_i32_15 = arith.constant 3 : i32
    %44 = vector.broadcast %c3_i32_15 : i32 to vector<16x5xi32>
    %45 = arith.muli %44, %3 : vector<16x5xi32>
    %c2_i32_16 = arith.constant 2 : i32
    %46 = vector.broadcast %c2_i32_16 : i32 to vector<16x5xi32>
    %47 = arith.addi %45, %46 : vector<16x5xi32>
    %48 = arith.cmpi eq, %2, %47 : vector<16x5xi32>
    %cst_17 = arith.constant 1.000000e+00 : f32
    %cst_18 = arith.constant 0.000000e+00 : f32
    %49 = vector.broadcast %cst_17 : f32 to vector<16x5xf32>
    %50 = vector.broadcast %cst_18 : f32 to vector<16x5xf32>
    %51 = arith.select %48, %49, %50 : vector<16x5xi1>, vector<16x5xf32>
    %c0 = arith.constant 0 : index
    %52 = memref.load %arg3[%c0] : memref<1xf32, #tpu.memory_space<smem>>
    %c0_19 = arith.constant 0 : index
    %c0_20 = arith.constant 0 : index
    %c0_21 = arith.constant 0 : index
    %c0_22 = arith.constant 0 : index
    %53 = vector.load %arg1[%c0_19, %c0_20, %c0_21, %c0_22] : memref<1x4x16x16xf32, #tpu.memory_space<vmem>>, vector<1x1x16x16xf32>
    %54 = vector.shape_cast %53 : vector<1x1x16x16xf32> to vector<16x16xf32>
    %c0_23 = arith.constant 0 : index
    %55 = memref.load %arg2[%c0_23] : memref<4xf32, #tpu.memory_space<smem>>
    %56 = vector.broadcast %55 : f32 to vector<16x16xf32>
    %57 = arith.mulf %54, %56 : vector<16x16xf32>
    %c0_24 = arith.constant 0 : index
    %c1 = arith.constant 1 : index
    %c0_25 = arith.constant 0 : index
    %c0_26 = arith.constant 0 : index
    %58 = vector.load %arg1[%c0_24, %c1, %c0_25, %c0_26] : memref<1x4x16x16xf32, #tpu.memory_space<vmem>>, vector<1x1x16x16xf32>
    %59 = vector.shape_cast %58 : vector<1x1x16x16xf32> to vector<16x16xf32>
    %c1_27 = arith.constant 1 : index
    %60 = memref.load %arg2[%c1_27] : memref<4xf32, #tpu.memory_space<smem>>
    %61 = vector.broadcast %60 : f32 to vector<16x16xf32>
    %62 = arith.mulf %59, %61 : vector<16x16xf32>
    %63 = arith.addf %57, %62 : vector<16x16xf32>
    %c0_28 = arith.constant 0 : index
    %c2 = arith.constant 2 : index
    %c0_29 = arith.constant 0 : index
    %c0_30 = arith.constant 0 : index
    %64 = vector.load %arg1[%c0_28, %c2, %c0_29, %c0_30] : memref<1x4x16x16xf32, #tpu.memory_space<vmem>>, vector<1x1x16x16xf32>
    %65 = vector.shape_cast %64 : vector<1x1x16x16xf32> to vector<16x16xf32>
    %c2_31 = arith.constant 2 : index
    %66 = memref.load %arg2[%c2_31] : memref<4xf32, #tpu.memory_space<smem>>
    %67 = vector.broadcast %66 : f32 to vector<16x16xf32>
    %68 = arith.mulf %65, %67 : vector<16x16xf32>
    %69 = arith.addf %63, %68 : vector<16x16xf32>
    %c0_32 = arith.constant 0 : index
    %c3 = arith.constant 3 : index
    %c0_33 = arith.constant 0 : index
    %c0_34 = arith.constant 0 : index
    %70 = vector.load %arg1[%c0_32, %c3, %c0_33, %c0_34] : memref<1x4x16x16xf32, #tpu.memory_space<vmem>>, vector<1x1x16x16xf32>
    %71 = vector.shape_cast %70 : vector<1x1x16x16xf32> to vector<16x16xf32>
    %c3_35 = arith.constant 3 : index
    %72 = memref.load %arg2[%c3_35] : memref<4xf32, #tpu.memory_space<smem>>
    %73 = vector.broadcast %72 : f32 to vector<16x16xf32>
    %74 = arith.mulf %71, %73 : vector<16x16xf32>
    %75 = arith.addf %69, %74 : vector<16x16xf32>
    %76 = vector.broadcast %52 : f32 to vector<16x16xf32>
    %77 = arith.addf %75, %76 : vector<16x16xf32>
    %cst_36 = arith.constant dense<0.000000e+00> : vector<5x16xf32>
    %78 = tpu.matmul %11, %77, %cst_36 {dimension_numbers = #tpu.dot_dimension_numbers<[1], [0], [0], [1], [0, 0, 1, 1], [], []>} : vector<5x16xf32>, vector<16x16xf32>, vector<5x16xf32> -> vector<5x16xf32>
    %cst_37 = arith.constant dense<0.000000e+00> : vector<5x16xf32>
    %79 = tpu.matmul %19, %77, %cst_37 {dimension_numbers = #tpu.dot_dimension_numbers<[1], [0], [0], [1], [0, 0, 1, 1], [], []>} : vector<5x16xf32>, vector<16x16xf32>, vector<5x16xf32> -> vector<5x16xf32>
    %80 = arith.maximumf %78, %79 : vector<5x16xf32>
    %cst_38 = arith.constant dense<0.000000e+00> : vector<5x16xf32>
    %81 = tpu.matmul %27, %77, %cst_38 {dimension_numbers = #tpu.dot_dimension_numbers<[1], [0], [0], [1], [0, 0, 1, 1], [], []>} : vector<5x16xf32>, vector<16x16xf32>, vector<5x16xf32> -> vector<5x16xf32>
    %82 = arith.maximumf %80, %81 : vector<5x16xf32>
    %cst_39 = arith.constant dense<0.000000e+00> : vector<5x5xf32>
    %83 = tpu.matmul %82, %35, %cst_39 {dimension_numbers = #tpu.dot_dimension_numbers<[1], [0], [0], [1], [0, 0, 1, 1], [], []>} : vector<5x16xf32>, vector<16x5xf32>, vector<5x5xf32> -> vector<5x5xf32>
    %cst_40 = arith.constant dense<0.000000e+00> : vector<5x5xf32>
    %84 = tpu.matmul %82, %43, %cst_40 {dimension_numbers = #tpu.dot_dimension_numbers<[1], [0], [0], [1], [0, 0, 1, 1], [], []>} : vector<5x16xf32>, vector<16x5xf32>, vector<5x5xf32> -> vector<5x5xf32>
    %85 = arith.maximumf %83, %84 : vector<5x5xf32>
    %cst_41 = arith.constant dense<0.000000e+00> : vector<5x5xf32>
    %86 = tpu.matmul %82, %51, %cst_41 {dimension_numbers = #tpu.dot_dimension_numbers<[1], [0], [0], [1], [0, 0, 1, 1], [], []>} : vector<5x16xf32>, vector<16x5xf32>, vector<5x5xf32> -> vector<5x5xf32>
    %87 = arith.maximumf %85, %86 : vector<5x5xf32>
    %c0_42 = arith.constant 0 : index
    %c0_43 = arith.constant 0 : index
    %c0_44 = arith.constant 0 : index
    %88 = vector.load %arg4[%c0_42, %c0_43, %c0_44] : memref<1x5x5xf32, #tpu.memory_space<vmem>>, vector<1x5x5xf32>
    %89 = vector.shape_cast %88 : vector<1x5x5xf32> to vector<5x5xf32>
    %90 = vector.shape_cast %87 : vector<5x5xf32> to vector<1x5x5xf32>
    tpu.vector_store %arg4[%c0_42, %c0_43, %c0_44], %90 {strides = array<i32>} : memref<1x5x5xf32, #tpu.memory_space<vmem>>, vector<1x5x5xf32>,
    return
  }
  func.func @transform_0(%arg0: i32) -> (i32, i32, i32, i32) {
    %c0_i32 = arith.constant 0 : i32
    %c0_i32_0 = arith.constant 0 : i32
    %c0_i32_1 = arith.constant 0 : i32
    %c0_i32_2 = arith.constant 0 : i32
    return %arg0, %c0_i32, %c0_i32_0, %c0_i32_1 : i32, i32, i32, i32
  }
  func.func @transform_1(%arg0: i32) -> i32 {
    %c0_i32 = arith.constant 0 : i32
    %c0_i32_0 = arith.constant 0 : i32
    return %c0_i32 : i32
  }
  func.func @transform_2(%arg0: i32) -> i32 {
    %c0_i32 = arith.constant 0 : i32
    %c0_i32_0 = arith.constant 0 : i32
    return %c0_i32 : i32
  }
  func.func @transform_3(%arg0: i32) -> (i32, i32, i32) {
    %c0_i32 = arith.constant 0 : i32
    %c0_i32_0 = arith.constant 0 : i32
    %c0_i32_1 = arith.constant 0 : i32
    return %arg0, %c0_i32, %c0_i32_0 : i32, i32, i32
  }
}

</mosaic_0001>

<bundles_post_ra>
// kernel: tpu_custom_call.1
= control target key start
LH: loop header
LB: loop body
LE: loop exit
PB: predicated region body
PF: predicated region fallthrough
CT: control target
= control target key end

     0   :  { %s959_s0 = inlined_call_operand.hbm [shape: f32[2,4,16,16], index: 0, kind: input, shape index: {}]   ;;  %s960_s1 = inlined_call_operand.vmem [shape: f32[4], index: 1, kind: input, shape index: {}]   ;;  %s961_s2 = inlined_call_operand.<no memory space> [shape: f32[1], index: 2, kind: input, shape index: {}]   ;;  %s962_s3 = inlined_call_operand.vmem [shape: f32[5,14], index: 3, kind: input, shape index: {}]   ;;  %s963_s4 = inlined_call_operand.vmem [shape: f32[14,5], index: 4, kind: input, shape index: {}]   ;;  %s964_s5 = inlined_call_operand.vmem [shape: f32[2,5,5], index: 5, kind: output, shape index: {}]  }
   0x1   :  { %10 = sst [smem:[#allocation2]] %s961_s2 }
   0x2   :  { %11 = vsyncpa [#allocation4], 0 }
   0x3   :  { %13 = vsyncpa [#allocation4 + $0x1], 0 }
   0x4   :  { %14 = vsyncpa [#allocation5], 0  ;;  %s815_s20 = smov 0   ;;  %s817_s21 = smov 0  }
   0x5   :  { %s819_s22 = smov 0   ;;  %s821_s23 = smov 0  }
   0x6 LB: > { %s834_s2 = sadd.s32 4294967295, %s770_s23   ;;  %s837_s24 = sadd.s32 1, %s770_s23   ;;  %s770_s23 = sphi %s821_s23, %s976_s23   ;;  %s766_s22 = sphi %s819_s22, %s975_s22   ;;  %s762_s21 = sphi %s817_s21, %s974_s21   ;;  %s758_s20 = sphi %s815_s20, %s973_s20  }
   0x7   : > { %s24_s25 = ssub.s32 %s770_s23, %s837_s24  ;;  %s27_s26 = sadd.s32 1, %s766_s22 }
   0x8   : > { %p25_p0 = scmp.eq.s32.totalorder %s24_s25, 0  ;;  %p34_p1 = scmp.ne.s32.totalorder %s766_s22, %s762_s21 }
   0x9   : > { %p35_p2 = scmp.eq.s32.totalorder %s770_s23, 0  ;;  %p40_p3 = scmp.ne.s32.totalorder %s762_s21, %s758_s20 }
   0xa   : > { %s847_s27 = scalar_select %p25_p0, %s766_s22, %s27_s26  }
   0xb   : > { %p36_p4 = por %p35_p2, %p34_p1  ;;  %p41_p5 = scmp.eq.s32.totalorder %s834_s2, 0 }
   0xc   : > { %p565_p6 = scmp.ge.s32.totalorder %s770_s23, 1  ;;  %p161_p7 = scmp.lt.s32.totalorder %s770_s23, 3 }
   0xd   : > { %p854_p8 = por %p41_p5, %p40_p3  ;;  %s174_s7 = sshll.u32 %s960_s1, 4  ;;  %s175_s7 = int_to_ptr.vmem [resolvable:$true] %s174_s7 }
   0xe   : > { %p858_p9 = pnand %p565_p6, %p161_p7  ;;  %p634_p11 = scmp.lt.s32.totalorder %s770_s23, 2 }
   0xf   : > { %s967_s28 = scalar_select %p854_p8, 1, 0 }
  0x10   : > { %s968_s29 = scalar_select %p858_p9, 1, 0 }
  0x11   : > { %p625_p10 = pneg %p858_p9  ;;  %s194_s8 = sand.u32 1, %s766_s22  }
  0x12   : > { %p875_p13 = pnand %p634_p11, %p36_p4  ;;  %s568_s11 = sshll.u32 %s194_s8, 6 }
  0x13   : > { %p871_p12 = pnand %p625_p10, %p41_p5  ;;  %s687_s12 = scalar_lea.vmem %s175_s7, 16 }
  0x14   : > { %p688_p0 = scmp.ne.s32.totalorder %s175_s7, %s687_s12  ;;  %p695_p6 = scmp.lt.s32.totalorder %s175_s7, %s175_s7 }
  0x15   : > { %p689_p1 = pneg %p871_p12  ;;  %p696_p7 = scmp.lt.s32.totalorder %s687_s12, %s687_s12 }
  0x17   : > { %p690_p2 = pnand %p689_p1, %p688_p0  ;;  %p697_p8 = por %p696_p7, %p695_p6 }
  0x19   : > { %p691_p3 = pneg %p690_p2 }
  0x1b   : > { %p698_p9 = pnand %p697_p8, %p691_p3 }
  0x1d   : > { %701 = shalt.err (!%p698_p9)
}
  0x1e   : > { %s772_s13 = smov [#allocation6]   ;;  %s590_s14 = sshll.u32 %s770_s23, 10 }
  0x1f   : > { %628 = dma.vmem_to_smem (!%p871_p12), %s175_s7, 16, %s772_s13, [#allocation5]  }
  0x20   : > { %s887_s17 = scalar_lea.hbm %s959_s0, %s590_s14  ;;  %s198_s18 = scalar_lea.vmem [#allocation3], %s568_s11 }
  0x21   : > { %s205_s19 = sshll.u32 %s198_s18, 4  ;;  %s891_s20 = scalar_lea.sflag [#allocation4], %s194_s8  ;;  %s889_s19 = int_to_ptr.vmem [resolvable:$true] %s205_s19 }
  0x22   : > { %s702_s25 = scalar_lea.hbm %s887_s17, 1024  ;;  %p704_p8 = pneg %p875_p13 }
  0x23   : > { %p703_p4 = scmp.ne.s32.totalorder %s887_s17, %s702_s25  ;;  %s707_s30 = scalar_lea.hbm %s959_s0, 2048 }
  0x24   : > { %p708_p11 = scmp.lt.u32.totalorder %s887_s17, %s959_s0  ;;  %p709_p12 = scmp.lt.u32.totalorder %s707_s30, %s702_s25 }
  0x25   : > { %p705_p9 = pnand %p704_p8, %p703_p4  ;;  %p711_p1 = scmp.lt.u32.totalorder %s702_s25, %s887_s17 }
  0x26   : > { %p710_p0 = por %p709_p12, %p708_p11 }
  0x27   : > { %p706_p10 = pneg %p705_p9 }
  0x28   : > { %p712_p2 = por %p711_p1, %p710_p0 }
  0x2a   : > { %p713_p3 = pnand %p712_p2, %p706_p10 }
  0x2c   : > { %716 = shalt.err (!%p713_p3)
}
  0x2d   : > { %s717_s8 = scalar_lea.vmem %s889_s19, 1024  ;;  %s773_s9 = smov [#allocation3]  }
  0x2e   : > { %p718_p6 = scmp.ne.s32.totalorder %s889_s19, %s717_s8  ;;  %s722_s11 = sshll.u32 %s773_s9, 4  ;;  %s723_s11 = int_to_ptr.vmem [resolvable:$false] %s722_s11 }
  0x2f   : > { %s724_s12 = scalar_lea.vmem %s723_s11, 2048  ;;  %p725_p9 = scmp.lt.s32.totalorder %s889_s19, %s723_s11 }
  0x30   : > { %p720_p7 = pnand %p718_p6, %p704_p8  ;;  %p726_p11 = scmp.lt.s32.totalorder %s724_s12, %s717_s8 }
  0x32   : > { %p721_p4 = pneg %p720_p7  ;;  %p727_p12 = por %p726_p11, %p725_p9 }
  0x34   : > { %p728_p0 = pnand %p727_p12, %p721_p4 }
  0x36   : > { %731 = shalt.err (!%p728_p0)
}
  0x37   : > { %s774_s13 = smov 128   ;;  %s775_s14 = smov 8  }
  0x38   : > { %632 = dma.hbm_to_vmem [thread:$0]  (!%p875_p13), %s887_s17, 1024, %s889_s19, %s891_s20, %s774_s13, %s774_s13, %s775_s14  }
  0x39   : > { %p971_p8 = scmp.ne.s32.totalorder %s968_s29, 0 }
  0x3a   : > { %s219_s15 = sand.u32 (!%p971_p8), 1, %s762_s21   ;;  %p972_p10 = scmp.ne.s32.totalorder (!%p971_p8), %s967_s28, 0 }
  0x3b   : > { %217 = sbr.rel (%p971_p8) target bundleno = 650 (0x28a), region = 40  ;;  %s572_s16 = sshll.u32 (!%p971_p8), %s219_s15, 6 }
  0x3c   : > { %s220_s18 = scalar_lea.sflag (!%p971_p8), [#allocation4], %s219_s15  ;;  %s223_s25 = scalar_lea.vmem (!%p971_p8), [#allocation3], %s572_s16 }
  0x42   : > { %749 = dma.done.wait (%p972_p10), %s220_s18, 1024  }
  0x43   : > { %751 = vsyncadd (%p972_p10), %s220_s18, 4294966272 }
  0x44   : > { %753 = dma.done.wait (%p41_p5), [#allocation5], 16  }
  0x45   : > { %755 = vsyncadd (%p41_p5), [#allocation5], 4294967280 }
  0x46   : > { %232 = sfence }
  0x47   : > { %s264_s29 = sld [smem:[#allocation6]]  ;;  %s577_s10 = sld [smem:[#allocation6 + $0x1]]  ;;  %v262_v0 = vld [vmem:[%s223_s25] sm:$0xff]  ;;  %v263_v1 = vld [vmem:[%s223_s25 + $0x8] sm:$0xff]  ;;  %v575_v2 = vld [vmem:[%s223_s25 + $0x10] sm:$0xff]  ;;  %vm297_vm0 = vcmask 1046528  }
  0x48   : > { %s580_s17 = sld [smem:[#allocation6 + $0x2]]  ;;  %s583_s19 = sld [smem:[#allocation6 + $0x3]]  ;;  %v576_v3 = vld [vmem:[%s223_s25 + $0x18] sm:$0xff]  ;;  %v578_v5 = vld [vmem:[%s223_s25 + $0x20] sm:$0xff]  ;;  %v579_v6 = vld [vmem:[%s223_s25 + $0x28] sm:$0xff]  ;;  %vm305_vm1 = vcmask 1045504  }
  0x49   : > { %v581_v10 = vld [vmem:[%s223_s25 + $0x30] sm:$0xff]  ;;  %v582_v11 = vld [vmem:[%s223_s25 + $0x38] sm:$0xff]  ;;  %v776_v34 = vmov 0.0|0.0   ;;  %vm777_vm2 = vmmov 0   ;;  %v778_v38 = vmov 0.0   ;;  %s779_s28 = smov 127  }
  0x4a   : > { %611 = vmatprep.subr.bf16.mxu0 %v776_v34  ;;  %615 = vmatprep.subr.bf16.mxu1 %v776_v34  ;;  %v259_v39 = vld [vmem:[%s963_s4] sm:$0xff]  ;;  %v260_v40 = vld [vmem:[%s963_s4 + $0x8] sm:$0x3f]  ;;  %vm780_vm3 = vmmov 1   ;;  %s781_s6 = smov 126   ;;  %vm331_vm5 = vcmask 113664  }
  0x4b   : > { %601 = vmatprep.mubr.msk.f32.mxu0 %vm777_vm2, %v778_v38  ;;  %608 = vmatprep.mubr.msk.f32.mxu1 %vm777_vm2, %v778_v38  ;;  %v616_v41 = vpack.c.bf16 %v260_v40, %v259_v39  ;;  %vm613_vm4 = vmpackc.low %vm305_vm1, %vm780_vm3  ;;  %v258_v53 = vld [vmem:[%s962_s3] sm:$0x1f]  ;;  %p254_p5 = scmp.lt.s32.totalorder %s834_s2, 1  ;;  %s261_s9 = sld [smem:[#allocation2]]  ;;  %vm485_vm6 = vcmask 36864  }
  0x4d   : > { %v265_v4 = vstv %s264_s29  ;;  %v272_v9 = vstv %s577_s10  ;;  %618 = vmatpush3.bf16.msk.msra.mxu1 %vm613_vm4, %v616_v41  ;;  %s978_s2 = smov (!%p254_p5, %s834_s2), 1 }
  0x4e   : > { %v266_v7 = vmul.f32 %v265_v4, %v262_v0  ;;  %v267_v8 = vmul.f32 %v265_v4, %v263_v1  ;;  %v273_v12 = vmul.f32 %v575_v2, %v272_v9  ;;  %v274_v13 = vmul.f32 %v576_v3, %v272_v9  ;;  %s574_s11 = sshll.u32 %s978_s2, 3 }
  0x4f   : > { %v281_v14 = vstv %s580_s17  ;;  %v290_v15 = vstv %s583_s19  ;;  %s257_s14 = scalar_lea.vmem %s964_s5, %s574_s11 }
  0x50   : > { %v282_v16 = vmul.f32 %v578_v5, %v281_v14  ;;  %v283_v17 = vmul.f32 %v579_v6, %v281_v14  ;;  %v275_v18 = vadd.f32 %v273_v12, %v266_v7  ;;  %v276_v19 = vadd.f32 %v274_v13, %v267_v8 }
  0x51   : > { %v291_v20 = vmul.f32 %v581_v10, %v290_v15  ;;  %v292_v21 = vmul.f32 %v582_v11, %v290_v15  ;;  %v408_v56 = vstv %s261_s9 }
  0x52   : > { %v284_v22 = vadd.f32 %v282_v16, %v275_v18  ;;  %v285_v23 = vadd.f32 %v283_v17, %v276_v19 }
  0x54   : > { %v293_v24 = vadd.f32 %v291_v20, %v284_v22  ;;  %v294_v25 = vadd.f32 %v292_v21, %v285_v23 }
  0x56   : > { %v298_v26 = vrot.slane %v293_v24, 1  ;;  %v299_v27 = vrot.slane %v294_v25, 1  ;;  %v306_v28 = vrot.slane %v293_v24, 2  ;;  %v307_v29 = vrot.slane %v294_v25, 2 }
  0x58   : > { %v300_v30 = vsel %vm297_vm0, %v298_v26, %v299_v27  ;;  %v304_v31 = vmax.f32 %v294_v25, %v299_v27  ;;  %v308_v32 = vsel %vm305_vm1, %v306_v28, %v307_v29 }
  0x59   : > { %v303_v33 = vmax.f32 %v293_v24, %v300_v30 }
  0x5a   : > { %v312_v35 = vmax.f32 %v304_v31, %v307_v29 }
  0x5b   : > { %v311_v36 = vmax.f32 %v303_v33, %v308_v32 }
  0x5d   : > { %v677_v37 = vpack.i.bf16 %v312_v35, %v311_v36 }
  0x5f   : > { %678 = vrot.lane.b32.xlu0 %v677_v37, %s779_s28 }
  0x63   : > { %683 = vrot.lane.b32.xlu0 %v677_v37, %s781_s6 }
  0xd1   : > { %v679_v42 = vpop.permute.xlu0 %678 }
  0xd2   : > { %v681_v43 = vunpack.i.h.bf16 %v679_v42  ;;  %v680_v44 = vunpack.i.l.bf16 %v679_v42 }
  0xd4   : > { %v322_v46 = vmax.f32 %v312_v35, %v681_v43  ;;  %v321_v47 = vmax.f32 %v311_v36, %v680_v44 }
  0xd5   : > { %v684_v45 = vpop.permute.xlu0 %683 }
  0xd6   : > { %v686_v48 = vunpack.i.h.bf16 %v684_v45  ;;  %v685_v49 = vunpack.i.l.bf16 %v684_v45 }
  0xd8   : > { %v329_v50 = vmax.f32 %v321_v47, %v685_v49  ;;  %v330_v51 = vmax.f32 %v322_v46, %v686_v48 }
  0xda   : > { %v612_v52 = vpack.c.bf16 %v330_v51, %v329_v50 }
  0xdc   : > { %614 = vmatpush3.bf16.msk.msra.mxu0 %vm613_vm4, %v612_v52 }
  0xdf   : > { %602 = vmatmul.mubr.msk.f32.vlgmr.msra.gmra.mrb[0].mxu0 %vm331_vm5, %v258_v53 }
 0x1b2   : > { %v404_v54 = vpop.f32.mrb[0].mxu0 }
 0x1b3   : > { %v603_v55 = vpop.f32.mrb[1].mxu0  ;;  %609 = vmatmul.mubr.msk.f32.vlgmr.msra.gmra.mrb[0].mxu1 %vm331_vm5, %v404_v54 }
 0x286   : > { %v481_v57 = vpop.f32.mrb[0].mxu1 }
 0x287   : > { %v482_v58 = vadd.f32 %v481_v57, %v408_v56  ;;  %v610_v59 = vpop.f32.mrb[1].mxu1 }
 0x289   : > { %486 = vst.msk [vmem:[%s257_s14] sm:$0x1f] %vm485_vm6, %v482_v58 }
 0x28a PF: > { %p17_p13 = scmp.ge.s32.totalorder %s837_s24, 4   ;;  %s973_s20 = smov %s762_s21 }
 0x28b   : > { %s974_s21 = smov %s766_s22  ;;  %s975_s22 = smov %s847_s27 }
 0x28c   : > { %s976_s23 = smov %s837_s24  ;;  %19 = sbr.rel (!%p17_p13) target bundleno = 6 (0x6), region = 88 }
 0x293   :  { %506 = vsyncpa [#allocation4], 1 }
 0x294   :  { %508 = vsyncpa [#allocation4 + $0x1], 1 }
 0x295   :  { %509 = vsyncpa [#allocation5], 1 }
 0x296   :  { %511 = vsyncpa [#allocation5 + $0x1], 1 }

// kernel: tpu_custom_call.1
= control target key start
LH: loop header
LB: loop body
LE: loop exit
PB: predicated region body
PF: predicated region fallthrough
CT: control target
= control target key end

     0   :  { %s1251_s0 = inlined_call_operand.hbm [shape: f32[2,4,16,16], index: 0, kind: input, shape index: {}]   ;;  %s1252_s1 = inlined_call_operand.vmem [shape: f32[4], index: 1, kind: input, shape index: {}]   ;;  %s1253_s2 = inlined_call_operand.<no memory space> [shape: f32[1], index: 2, kind: input, shape index: {}]   ;;  %s1254_s3 = inlined_call_operand.vmem [shape: f32[2,5,5], index: 3, kind: output, shape index: {}]  }
   0x1   :  { %8 = sst [smem:[#allocation2]] %s1253_s2 }
   0x2   :  { %9 = vsyncpa [#allocation4], 0 }
   0x3   :  { %11 = vsyncpa [#allocation4 + $0x1], 0 }
   0x4   :  { %12 = vsyncpa [#allocation5], 0  ;;  %s1071_s14 = smov 0   ;;  %s1073_s15 = smov 0  }
   0x5   :  { %s1075_s16 = smov 0   ;;  %s1077_s17 = smov 0  }
   0x6 LB: > { %s1090_s2 = sadd.s32 4294967295, %s1038_s17   ;;  %s1093_s18 = sadd.s32 1, %s1038_s17   ;;  %s1038_s17 = sphi %s1077_s17, %s1266_s17   ;;  %s1034_s16 = sphi %s1075_s16, %s1265_s16   ;;  %s1030_s15 = sphi %s1073_s15, %s1264_s15   ;;  %s1026_s14 = sphi %s1071_s14, %s1263_s14  }
   0x7   : > { %s22_s19 = ssub.s32 %s1038_s17, %s1093_s18  ;;  %s25_s20 = sadd.s32 1, %s1034_s16 }
   0x8   : > { %p23_p0 = scmp.eq.s32.totalorder %s22_s19, 0  ;;  %p32_p1 = scmp.ne.s32.totalorder %s1034_s16, %s1030_s15 }
   0x9   : > { %p33_p2 = scmp.eq.s32.totalorder %s1038_s17, 0  ;;  %p38_p3 = scmp.ne.s32.totalorder %s1030_s15, %s1026_s14 }
   0xa   : > { %s1103_s21 = scalar_select %p23_p0, %s1034_s16, %s25_s20  }
   0xb   : > { %p34_p4 = por %p33_p2, %p32_p1  ;;  %p39_p5 = scmp.eq.s32.totalorder %s1090_s2, 0 }
   0xc   : > { %p787_p6 = scmp.ge.s32.totalorder %s1038_s17, 1  ;;  %p117_p7 = scmp.lt.s32.totalorder %s1038_s17, 3 }
   0xd   : > { %p1110_p8 = por %p39_p5, %p38_p3  ;;  %s130_s26 = sshll.u32 %s1252_s1, 4  ;;  %s131_s26 = int_to_ptr.vmem [resolvable:$true] %s130_s26 }
   0xe   : > { %p1114_p9 = pnand %p787_p6, %p117_p7  ;;  %p914_p11 = scmp.lt.s32.totalorder %s1038_s17, 2 }
   0xf   : > { %s1257_s22 = scalar_select %p1110_p8, 1, 0 }
  0x10   : > { %s1258_s23 = scalar_select %p1114_p9, 1, 0 }
  0x11   : > { %p905_p10 = pneg %p1114_p9  ;;  %s144_s27 = sand.u32 1, %s1034_s16  }
  0x12   : > { %p1131_p13 = pnand %p914_p11, %p34_p4  ;;  %s790_s30 = sshll.u32 %s144_s27, 6 }
  0x13   : > { %p1127_p12 = pnand %p905_p10, %p39_p5  ;;  %s955_s4 = scalar_lea.vmem %s131_s26, 16 }
  0x14   : > { %p956_p0 = scmp.ne.s32.totalorder %s131_s26, %s955_s4  ;;  %p963_p6 = scmp.lt.s32.totalorder %s131_s26, %s131_s26 }
  0x15   : > { %p957_p1 = pneg %p1127_p12  ;;  %p964_p7 = scmp.lt.s32.totalorder %s955_s4, %s955_s4 }
  0x17   : > { %p958_p2 = pnand %p957_p1, %p956_p0  ;;  %p965_p8 = por %p964_p7, %p963_p6 }
  0x19   : > { %p959_p3 = pneg %p958_p2 }
  0x1b   : > { %p966_p9 = pnand %p965_p8, %p959_p3 }
  0x1d   : > { %969 = shalt.err (!%p966_p9)
}
  0x1e   : > { %s1040_s5 = smov [#allocation6]   ;;  %s820_s6 = sshll.u32 %s1038_s17, 10 }
  0x1f   : > { %908 = dma.vmem_to_smem (!%p1127_p12), %s131_s26, 16, %s1040_s5, [#allocation5]  }
  0x20   : > { %s1143_s9 = scalar_lea.hbm %s1251_s0, %s820_s6  ;;  %s148_s10 = scalar_lea.vmem [#allocation3], %s790_s30 }
  0x21   : > { %s155_s11 = sshll.u32 %s148_s10, 4  ;;  %s1147_s12 = scalar_lea.sflag [#allocation4], %s144_s27  ;;  %s1145_s11 = int_to_ptr.vmem [resolvable:$true] %s155_s11 }
  0x22   : > { %s970_s13 = scalar_lea.hbm %s1143_s9, 1024  ;;  %p972_p8 = pneg %p1131_p13 }
  0x23   : > { %p971_p4 = scmp.ne.s32.totalorder %s1143_s9, %s970_s13  ;;  %s975_s19 = scalar_lea.hbm %s1251_s0, 2048 }
  0x24   : > { %p976_p11 = scmp.lt.u32.totalorder %s1143_s9, %s1251_s0  ;;  %p977_p12 = scmp.lt.u32.totalorder %s975_s19, %s970_s13 }
  0x25   : > { %p973_p9 = pnand %p972_p8, %p971_p4  ;;  %p979_p1 = scmp.lt.u32.totalorder %s970_s13, %s1143_s9 }
  0x26   : > { %p978_p0 = por %p977_p12, %p976_p11 }
  0x27   : > { %p974_p10 = pneg %p973_p9 }
  0x28   : > { %p980_p2 = por %p979_p1, %p978_p0 }
  0x2a   : > { %p981_p3 = pnand %p980_p2, %p974_p10 }
  0x2c   : > { %984 = shalt.err (!%p981_p3)
}
  0x2d   : > { %s985_s25 = scalar_lea.vmem %s1145_s11, 1024  ;;  %s1041_s26 = smov [#allocation3]  }
  0x2e   : > { %p986_p6 = scmp.ne.s32.totalorder %s1145_s11, %s985_s25  ;;  %s990_s27 = sshll.u32 %s1041_s26, 4  ;;  %s991_s27 = int_to_ptr.vmem [resolvable:$false] %s990_s27 }
  0x2f   : > { %s992_s28 = scalar_lea.vmem %s991_s27, 2048  ;;  %p993_p9 = scmp.lt.s32.totalorder %s1145_s11, %s991_s27 }
  0x30   : > { %p988_p7 = pnand %p986_p6, %p972_p8  ;;  %p994_p11 = scmp.lt.s32.totalorder %s992_s28, %s985_s25 }
  0x32   : > { %p989_p4 = pneg %p988_p7  ;;  %p995_p12 = por %p994_p11, %p993_p9 }
  0x34   : > { %p996_p0 = pnand %p995_p12, %p989_p4 }
  0x36   : > { %999 = shalt.err (!%p996_p0)
}
  0x37   : > { %s1042_s30 = smov 128   ;;  %s1043_s4 = smov 8  }
  0x38   : > { %912 = dma.hbm_to_vmem [thread:$0]  (!%p1131_p13), %s1143_s9, 1024, %s1145_s11, %s1147_s12, %s1042_s30, %s1042_s30, %s1043_s4  }
  0x39   : > { %p1261_p8 = scmp.ne.s32.totalorder %s1258_s23, 0 }
  0x3a   : > { %s169_s5 = sand.u32 (!%p1261_p8), 1, %s1030_s15   ;;  %p1262_p10 = scmp.ne.s32.totalorder (!%p1261_p8), %s1257_s22, 0 }
  0x3b   : > { %167 = sbr.rel (%p1261_p8) target bundleno = 530 (0x212), region = 32  ;;  %s794_s6 = sshll.u32 (!%p1261_p8), %s169_s5, 6 }
  0x3c   : > { %s170_s7 = scalar_lea.sflag (!%p1261_p8), [#allocation4], %s169_s5  ;;  %s1178_s8 = scalar_lea.vmem (!%p1261_p8), [#allocation3], %s794_s6 }
  0x42   : > { %1017 = dma.done.wait (%p1262_p10), %s170_s7, 1024  }
  0x43   : > { %1019 = vsyncadd (%p1262_p10), %s170_s7, 4294966272 }
  0x44   : > { %1021 = dma.done.wait (%p39_p5), [#allocation5], 16  }
  0x45   : > { %1023 = vsyncadd (%p39_p5), [#allocation5], 4294967280 }
  0x46   : > { %182 = sfence }
  0x47   : > { %v1044_v0 = vmov 0.0|0.0   ;;  %s236_s23 = sld [smem:[#allocation6]]  ;;  %s799_s29 = sld [smem:[#allocation6 + $0x1]]  ;;  %v204_v1 = vlaneseq  ;;  %v234_v2 = vld [vmem:[%s1178_s8] sm:$0xff]  ;;  %vm1045_vm0 = vmmov 0   ;;  %v1046_v3 = vmov 0.0  }
  0x48   : > { %881 = vmatprep.subr.bf16.mxu0 %v1044_v0  ;;  %884 = vmatprep.subr.bf16.mxu1 %v1044_v0  ;;  %s802_s22 = sld [smem:[#allocation6 + $0x2]]  ;;  %s805_s9 = sld [smem:[#allocation6 + $0x3]]  ;;  %v235_v4 = vld [vmem:[%s1178_s8 + $0x8] sm:$0xff]  ;;  %v797_v5 = vld [vmem:[%s1178_s8 + $0x10] sm:$0xff]  ;;  %v798_v6 = vld [vmem:[%s1178_s8 + $0x18] sm:$0xff]  ;;  %vm270_vm3 = vcmask 130048  }
  0x49   : > { %843 = vmatprep.mubr.msk.f32.mxu0 %vm1045_vm0, %v1046_v3  ;;  %850 = vmatprep.mubr.msk.f32.mxu1 %vm1045_vm0, %v1046_v3  ;;  %s1195_s10 = sld [smem:[#allocation2]]  ;;  %v1200_v7 = vshrl.u32 %v204_v1, 7  ;;  %v800_v10 = vld [vmem:[%s1178_s8 + $0x20] sm:$0xff]  ;;  %v801_v11 = vld [vmem:[%s1178_s8 + $0x28] sm:$0xff]  ;;  %v803_v16 = vld [vmem:[%s1178_s8 + $0x30] sm:$0xff]  ;;  %v207_v30 = vand.u32 127, %v204_v1 }
  0x4a   : > { %v804_v17 = vld [vmem:[%s1178_s8 + $0x38] sm:$0xff]  ;;  %v1047_v44 = vmov 1.0|1.0   ;;  %p200_p5 = scmp.lt.s32.totalorder %s1090_s2, 1  ;;  %vm707_vm14 = vcmask 36864  }
  0x4b   : > { %v209_v20 = vmul.u32 3, %v1200_v7  ;;  %v218_v41 = vmul.u32 3, %v207_v30  ;;  %v208_v42 = vadd.s32 8, %v1200_v7 }
  0x4c   : > { %s1268_s2 = smov (!%p200_p5, %s1090_s2), 1 }
  0x4d   : > { %v237_v8 = vstv %s236_s23  ;;  %v244_v9 = vstv %s799_s29  ;;  %v212_v31 = vadd.s32 1, %v209_v20  ;;  %vm210_vm1 = vcmp.eq.s32.totalorder %v207_v30, %v209_v20  ;;  %s796_s11 = sshll.u32 %s1268_s2, 3 }
  0x4e   : > { %v238_v12 = vmul.f32 %v237_v8, %v234_v2  ;;  %v239_v13 = vmul.f32 %v237_v8, %v235_v4  ;;  %v245_v14 = vmul.f32 %v797_v5, %v244_v9  ;;  %v246_v15 = vmul.f32 %v798_v6, %v244_v9  ;;  %s203_s14 = scalar_lea.vmem %s1254_s3, %s796_s11 }
  0x4f   : > { %v253_v18 = vstv %s802_s22  ;;  %v262_v19 = vstv %s805_s9  ;;  %v267_v29 = vstv %s1195_s10  ;;  %vm213_vm2 = vcmp.eq.s32.totalorder %v207_v30, %v212_v31 }
  0x50   : > { %v247_v21 = vadd.f32 %v245_v14, %v238_v12  ;;  %v248_v22 = vadd.f32 %v246_v15, %v239_v13  ;;  %v254_v23 = vmul.f32 %v800_v10, %v253_v18  ;;  %v255_v24 = vmul.f32 %v801_v11, %v253_v18 }
  0x51   : > { %v263_v25 = vmul.f32 %v803_v16, %v262_v19  ;;  %v264_v26 = vmul.f32 %v804_v17, %v262_v19  ;;  %v215_v36 = vadd.s32 2, %v209_v20  ;;  %v211_v38 = vsel %vm210_vm1, 1.0, %v1046_v3 }
  0x52   : > { %v256_v27 = vadd.f32 %v254_v23, %v247_v21  ;;  %v257_v28 = vadd.f32 %v255_v24, %v248_v22  ;;  %v214_v39 = vsel %vm213_vm2, 1.0, %v1046_v3  ;;  %v223_v43 = vadd.s32 1, %v218_v41 }
  0x53   : > { %vm216_vm4 = vcmp.eq.s32.totalorder %v207_v30, %v215_v36  ;;  %vm219_vm5 = vcmp.eq.s32.totalorder %v1200_v7, %v218_v41  ;;  %vm220_vm6 = vcmp.eq.s32.totalorder %v208_v42, %v218_v41  ;;  %v228_v45 = vadd.s32 2, %v218_v41 }
  0x54   : > { %v265_v32 = vadd.f32 %v263_v25, %v256_v27  ;;  %v266_v33 = vadd.f32 %v264_v26, %v257_v28  ;;  %v217_v40 = vsel %vm216_vm4, 1.0, %v1046_v3  ;;  %vm224_vm7 = vcmp.eq.s32.totalorder %v1200_v7, %v223_v43  ;;  %vm891_vm9 = vmpackc.low %vm220_vm6, %vm219_vm5 }
  0x55   : > { %vm225_vm8 = vcmp.eq.s32.totalorder %v208_v42, %v223_v43  ;;  %vm229_vm11 = vcmp.eq.s32.totalorder %v1200_v7, %v228_v45  ;;  %vm230_vm12 = vcmp.eq.s32.totalorder %v208_v42, %v228_v45 }
  0x56   : > { %v268_v34 = vadd.f32 %v267_v29, %v265_v32  ;;  %v269_v35 = vadd.f32 %v267_v29, %v266_v33  ;;  %vm894_vm10 = vmpackc.low %vm225_vm8, %vm224_vm7 }
  0x57   : > { %vm897_vm13 = vmpackc.low %vm230_vm12, %vm229_vm11 }
  0x58   : > { %v882_v37 = vpack.c.bf16 %v269_v35, %v268_v34 }
  0x5a   : > { %883 = vmatpush3.bf16.msra.mxu0 %v882_v37  ;;  %886 = vmatpush3.bf16.msra.mxu1 %v882_v37 }
  0x5b   : > { %887 = vmatprep.subr.bf16.mxu0 %v1044_v0  ;;  %890 = vmatprep.subr.bf16.mxu1 %v1044_v0 }
  0x5d   : > { %844 = vmatmul.mubr.msk.f32.vlgmr.msra.gmra.mrb[0].mxu0 %vm270_vm3, %v211_v38  ;;  %851 = vmatmul.mubr.msk.f32.vlgmr.msra.gmra.mrb[0].mxu1 %vm270_vm3, %v214_v39 }
  0x5e   : > { %889 = vmatpush3.bf16.msra.mxu0 %v882_v37  ;;  %857 = vmatprep.mubr.msk.f32.mxu0 %vm1045_vm0, %v1046_v3 }
  0x5f   : > { %893 = vmatprep.subr.bf16.mxu0 %v1044_v0  ;;  %864 = vmatprep.mubr.msk.f32.mxu1 %vm1045_vm0, %v1046_v3 }
  0x60   : > { %892 = vmatpush3.bf16.msk.msra.mxu1 %vm891_vm9, %v1047_v44 }
  0x61   : > { %858 = vmatmul.mubr.msk.f32.vlgmr.msra.gmra.mrb[2].mxu0 %vm270_vm3, %v217_v40  ;;  %896 = vmatprep.subr.bf16.mxu1 %v1044_v0 }
  0x62   : > { %871 = vmatprep.mubr.msk.f32.mxu0 %vm1045_vm0, %v1046_v3  ;;  %895 = vmatpush3.bf16.msk.msra.mxu0 %vm894_vm10, %v1047_v44 }
 0x130   : > { %v340_v46 = vpop.f32.mrb[0].mxu0  ;;  %v413_v47 = vpop.f32.mrb[0].mxu1 }
 0x131   : > { %v845_v48 = vpop.f32.mrb[1].mxu0  ;;  %v417_v49 = vmax.f32 %v340_v46, %v413_v47  ;;  %v852_v50 = vpop.f32.mrb[1].mxu1 }
 0x134   : > { %v487_v51 = vpop.f32.mrb[2].mxu0 }
 0x135   : > { %v491_v52 = vmax.f32 %v417_v49, %v487_v51  ;;  %v859_v53 = vpop.f32.mrb[3].mxu0 }
 0x137   : > { %865 = vmatmul.mubr.msk.f32.vlgmr.msra.gmra.mrb[2].mxu1 %vm270_vm3, %v491_v52  ;;  %872 = vmatmul.mubr.msk.f32.vlgmr.msra.gmra.mrb[4].mxu0 %vm270_vm3, %v491_v52 }
 0x138   : > { %898 = vmatpush3.bf16.msk.msra.mxu1 %vm897_vm13, %v1047_v44  ;;  %878 = vmatprep.mubr.msk.f32.mxu1 %vm1045_vm0, %v1046_v3 }
 0x13b   : > { %879 = vmatmul.mubr.msk.f32.vlgmr.msra.gmra.mrb[4].mxu1 %vm270_vm3, %v491_v52 }
 0x20a   : > { %v561_v54 = vpop.f32.mrb[2].mxu1  ;;  %v631_v55 = vpop.f32.mrb[4].mxu0 }
 0x20b   : > { %v635_v56 = vmax.f32 %v561_v54, %v631_v55  ;;  %v866_v57 = vpop.f32.mrb[3].mxu1  ;;  %v873_v58 = vpop.f32.mrb[5].mxu0 }
 0x20e   : > { %v702_v59 = vpop.f32.mrb[4].mxu1 }
 0x20f   : > { %v706_v60 = vmax.f32 %v635_v56, %v702_v59  ;;  %v880_v61 = vpop.f32.mrb[5].mxu1 }
 0x211   : > { %708 = vst.msk [vmem:[%s203_s14] sm:$0x1f] %vm707_vm14, %v706_v60 }
 0x212 PF: > { %p15_p13 = scmp.ge.s32.totalorder %s1093_s18, 4   ;;  %s1263_s14 = smov %s1030_s15 }
 0x213   : > { %s1264_s15 = smov %s1034_s16  ;;  %s1265_s16 = smov %s1103_s21 }
 0x214   : > { %s1266_s17 = smov %s1093_s18  ;;  %17 = sbr.rel (!%p15_p13) target bundleno = 6 (0x6), region = 80 }
 0x21b   :  { %728 = vsyncpa [#allocation4], 1 }
 0x21c   :  { %730 = vsyncpa [#allocation4 + $0x1], 1 }
 0x21d   :  { %731 = vsyncpa [#allocation5], 1 }
 0x21e   :  { %733 = vsyncpa [#allocation5 + $0x1], 1 }

</bundles_post_ra>
